<compile_context>
chip_gen: v6e
topology: v6e:2x2x1
jax: 0.10.0
libtpu: 0.0.40
codegen_flags: <defaults>
</compile_context>

<pallas_src>
import jax
import jax.numpy as jnp
from jax import lax
from jax.experimental import pallas as pl
from jax.experimental.pallas import tpu as pltpu

_NUM_SPLITS = 2            # leading "parallel" grid axis (2 TCs on v7x)
_LANE = 128
_BLOCK_BUDGET = 24 << 20   # bytes for 2 inputs x 2 pipeline buffers (fits v7x)
_MAX_TK = 65536            # cap on the reduction tile width


def _gram_kernel(s_ref, t_ref, gs_ref, gt_ref):
    """Accumulate partial Gram matrices for one D-tile of student/teacher."""
    k = pl.program_id(1)

    @pl.when(k == 0)
    def _():
        gs_ref[...] = jnp.zeros_like(gs_ref)
        gt_ref[...] = jnp.zeros_like(gt_ref)

    s = s_ref[...]  # (B, tk), native dtype (bf16 / f32)
    t = t_ref[...]
    # A·Aᵀ as a direct contraction of dim 1 with dim 1 (no materialized
    # transpose); MXU accumulates in f32.
    dn = (((1,), (1,)), ((), ()))
    gs_ref[...] += lax.dot_general(s, s, dimension_numbers=dn,
                                   preferred_element_type=jnp.float32)
    gt_ref[...] += lax.dot_general(t, t, dimension_numbers=dn,
                                   preferred_element_type=jnp.float32)


def _loss_kernel(gs_ref, gt_ref, out_ref):
    """Combine split Grams, row-wise L2 normalize (eps=1e-12), mean MSE."""
    gs = gs_ref[0] + gs_ref[1]           # (B, B) f32
    gt = gt_ref[0] + gt_ref[1]
    eps = jnp.float32(1e-12)             # F.normalize default eps
    ns = jnp.sqrt(jnp.sum(gs * gs, axis=1, keepdims=True))
    nt = jnp.sqrt(jnp.sum(gt * gt, axis=1, keepdims=True))
    gs_n = gs / jnp.maximum(ns, eps)
    gt_n = gt / jnp.maximum(nt, eps)
    d = gs_n - gt_n
    sq = d * d
    # Two-stage keepdims reduction -> (1, 1); divide by element count (mean).
    tot = jnp.sum(jnp.sum(sq, axis=1, keepdims=True), axis=0, keepdims=True)
    out_ref[...] = tot * jnp.float32(1.0 / sq.size)


def _round_up(x, m):
    return ((x + m - 1) // m) * m


def sp_loss(fm_s, fm_t):
    """Pallas implementation of SPLoss.forward(fm_s, fm_t)."""
    B = fm_s.shape[0]
    assert fm_t.shape[0] == B, "student/teacher batch sizes must match"

    # Flatten to (B, D); keep the native dtype so the kernel streams the
    # minimum number of bytes from HBM (Gram accumulation is f32 regardless).
    s2 = fm_s.reshape(B, -1)
    t2 = fm_t.reshape(B, -1)
    if s2.dtype not in (jnp.bfloat16, jnp.float32):
        s2 = s2.astype(jnp.float32)
    if t2.dtype not in (jnp.bfloat16, jnp.float32):
        t2 = t2.astype(jnp.float32)
    d_s, d_t = s2.shape[1], t2.shape[1]
    d_max = max(d_s, d_t)
    bytes_per = max(jnp.dtype(s2.dtype).itemsize, jnp.dtype(t2.dtype).itemsize)

    # Reduction tile: as large as the VMEM budget allows
    # (2 inputs x 2 pipeline buffers), never padding D by more than ~1 tile.
    tk_budget = max(_LANE, (_BLOCK_BUDGET // 4) // (B * bytes_per))
    tk_budget = min(tk_budget, _MAX_TK)
    tk_need = pl.cdiv(d_max, _NUM_SPLITS)
    tk = _round_up(min(tk_budget, tk_need), _LANE)
    kt = pl.cdiv(d_max, _NUM_SPLITS * tk)      # D-tiles per split
    d_pad = _NUM_SPLITS * kt * tk

    # Zero-pad the feature dim (zero columns leave the Gram unchanged). This
    # also lets student / teacher have different flattened widths, as the
    # original PyTorch module allows.
    if d_pad != d_s:
        s2 = jnp.pad(s2, ((0, 0), (0, d_pad - d_s)))
    if d_pad != d_t:
        t2 = jnp.pad(t2, ((0, 0), (0, d_pad - d_t)))

    # VMEM: 2 inputs x 2 buffers x (B, tk) blocks + tiny (B, B) outputs + slack.
    vmem_need = 4 * B * tk * bytes_per + 4 * _NUM_SPLITS * B * B * 4 + (4 << 20)
    vmem_limit = int(min(48 << 20, max(32 << 20, vmem_need)))

    in_map = lambda p, k: (0, p * kt + k)

    gs_parts, gt_parts = pl.pallas_call(
        _gram_kernel,
        out_shape=(
            jax.ShapeDtypeStruct((_NUM_SPLITS, B, B), jnp.float32),
            jax.ShapeDtypeStruct((_NUM_SPLITS, B, B), jnp.float32),
        ),
        grid_spec=pltpu.PrefetchScalarGridSpec(
            num_scalar_prefetch=0,
            grid=(_NUM_SPLITS, kt),
            in_specs=[
                pl.BlockSpec((B, tk), in_map),
                pl.BlockSpec((B, tk), in_map),
            ],
            out_specs=[
                pl.BlockSpec((None, B, B), lambda p, k: (p, 0, 0)),
                pl.BlockSpec((None, B, B), lambda p, k: (p, 0, 0)),
            ],
        ),
        compiler_params=pltpu.CompilerParams(
            dimension_semantics=("parallel", "arbitrary"),
            vmem_limit_bytes=vmem_limit,
        ),
    )(s2, t2)

    # Tiny epilogue on the (2, B, B) partial Grams (single invocation, all
    # data already fits in VMEM).
    out = pl.pallas_call(
        _loss_kernel,
        out_shape=jax.ShapeDtypeStruct((1, 1), jnp.float32),
    )(gs_parts, gt_parts)
    return out[0, 0]


def _sp_loss_ref(fm_s, fm_t):
    B = fm_s.shape[0]
    s = fm_s.reshape(B, -1).astype(jnp.float32)
    t = fm_t.reshape(B, -1).astype(jnp.float32)
    gs = s @ s.T
    gt = t @ t.T
    eps = 1e-12
    gs_n = gs / jnp.maximum(jnp.linalg.norm(gs, axis=1, keepdims=True), eps)
    gt_n = gt / jnp.maximum(jnp.linalg.norm(gt, axis=1, keepdims=True), eps)
    return jnp.mean((gs_n - gt_n) ** 2)


if __name__ == "__main__":
    key = jax.random.PRNGKey(0)
    k1, k2 = jax.random.split(key)
    B, C, H, W = 8, 4, 16, 16  # D = C*H*W = 1024
    fm_s = jax.random.normal(k1, (B, C, H, W), dtype=jnp.float32)
    fm_t = jax.random.normal(k2, (B, C, H, W), dtype=jnp.float32)

    loss = jax.block_until_ready(sp_loss(fm_s, fm_t))
    ref = jax.block_until_ready(_sp_loss_ref(fm_s, fm_t))

    # Loose tolerance: MXU f32 matmul decomposition differs slightly from the
    # XLA reference matmul precision; semantic bugs would be orders of
    # magnitude larger than this.
    assert jnp.allclose(loss, ref, rtol=1e-3, atol=1e-5), (loss, ref)
    print("KERNEL_OK")
</pallas_src>

<mosaic_0001>
module attributes {stable_mosaic.version = 11 : i64} {
  func.func @_gram_kernel(%arg0: i32, %arg1: i32, %arg2: memref<8x512xf32, #tpu.memory_space<vmem>>, %arg3: memref<8x512xf32, #tpu.memory_space<vmem>>, %arg4: memref<1x8x8xf32, #tpu.memory_space<vmem>>, %arg5: memref<1x8x8xf32, #tpu.memory_space<vmem>>) attributes {dimension_semantics = [#tpu.dimension_semantics<parallel>, #tpu.dimension_semantics<arbitrary>], iteration_bounds = array<i64: 2, 1>, scalar_prefetch = 0 : i64, scratch_operands = 0 : i64, tpu.core_type = #tpu.core_type<tc>, window_params = [{transform_indices = @transform_0, window_bounds = array<i64: 8, 512>}, {transform_indices = @transform_1, window_bounds = array<i64: 8, 512>}, {transform_indices = @transform_2, window_bounds = array<i64: 1, 8, 8>}, {transform_indices = @transform_3, window_bounds = array<i64: 1, 8, 8>}]} {
    %c0_i32 = arith.constant 0 : i32
    %0 = arith.cmpi eq, %arg1, %c0_i32 : i32
    %1 = arith.extui %0 : i1 to i32
    %c0_i32_0 = arith.constant 0 : i32
    %2 = arith.cmpi ne, %1, %c0_i32_0 : i32
    scf.if %2 {
      %cst_17 = arith.constant 0.000000e+00 : f32
      %19 = vector.broadcast %cst_17 : f32 to vector<8x8xf32>
      %c0_18 = arith.constant 0 : index
      %c0_19 = arith.constant 0 : index
      %c0_20 = arith.constant 0 : index
      %20 = vector.load %arg4[%c0_18, %c0_19, %c0_20] : memref<1x8x8xf32, #tpu.memory_space<vmem>>, vector<1x8x8xf32>
      %21 = vector.shape_cast %20 : vector<1x8x8xf32> to vector<8x8xf32>
      %22 = vector.shape_cast %19 : vector<8x8xf32> to vector<1x8x8xf32>
      tpu.vector_store %arg4[%c0_18, %c0_19, %c0_20], %22 {strides = array<i32>} : memref<1x8x8xf32, #tpu.memory_space<vmem>>, vector<1x8x8xf32>,
      %cst_21 = arith.constant 0.000000e+00 : f32
      %23 = vector.broadcast %cst_21 : f32 to vector<8x8xf32>
      %c0_22 = arith.constant 0 : index
      %c0_23 = arith.constant 0 : index
      %c0_24 = arith.constant 0 : index
      %24 = vector.load %arg5[%c0_22, %c0_23, %c0_24] : memref<1x8x8xf32, #tpu.memory_space<vmem>>, vector<1x8x8xf32>
      %25 = vector.shape_cast %24 : vector<1x8x8xf32> to vector<8x8xf32>
      %26 = vector.shape_cast %23 : vector<8x8xf32> to vector<1x8x8xf32>
      tpu.vector_store %arg5[%c0_22, %c0_23, %c0_24], %26 {strides = array<i32>} : memref<1x8x8xf32, #tpu.memory_space<vmem>>, vector<1x8x8xf32>,
    } else {
    }
    %c0 = arith.constant 0 : index
    %c0_1 = arith.constant 0 : index
    %3 = vector.load %arg2[%c0, %c0_1] : memref<8x512xf32, #tpu.memory_space<vmem>>, vector<8x512xf32>
    %c0_2 = arith.constant 0 : index
    %c0_3 = arith.constant 0 : index
    %4 = vector.load %arg3[%c0_2, %c0_3] : memref<8x512xf32, #tpu.memory_space<vmem>>, vector<8x512xf32>
    %c0_4 = arith.constant 0 : index
    %c0_5 = arith.constant 0 : index
    %c0_6 = arith.constant 0 : index
    %5 = vector.load %arg4[%c0_4, %c0_5, %c0_6] : memref<1x8x8xf32, #tpu.memory_space<vmem>>, vector<1x8x8xf32>
    %6 = vector.shape_cast %5 : vector<1x8x8xf32> to vector<8x8xf32>
    %cst = arith.constant dense<0.000000e+00> : vector<8x8xf32>
    %7 = tpu.matmul %3, %3, %cst {dimension_numbers = #tpu.dot_dimension_numbers<[1], [1], [0], [0], [0, 0, 1, 0], [], []>} : vector<8x512xf32>, vector<8x512xf32>, vector<8x8xf32> -> vector<8x8xf32>
    %8 = arith.addf %6, %7 : vector<8x8xf32>
    %c0_7 = arith.constant 0 : index
    %c0_8 = arith.constant 0 : index
    %c0_9 = arith.constant 0 : index
    %9 = vector.load %arg4[%c0_7, %c0_8, %c0_9] : memref<1x8x8xf32, #tpu.memory_space<vmem>>, vector<1x8x8xf32>
    %10 = vector.shape_cast %9 : vector<1x8x8xf32> to vector<8x8xf32>
    %11 = vector.shape_cast %8 : vector<8x8xf32> to vector<1x8x8xf32>
    tpu.vector_store %arg4[%c0_7, %c0_8, %c0_9], %11 {strides = array<i32>} : memref<1x8x8xf32, #tpu.memory_space<vmem>>, vector<1x8x8xf32>,
    %c0_10 = arith.constant 0 : index
    %c0_11 = arith.constant 0 : index
    %c0_12 = arith.constant 0 : index
    %12 = vector.load %arg5[%c0_10, %c0_11, %c0_12] : memref<1x8x8xf32, #tpu.memory_space<vmem>>, vector<1x8x8xf32>
    %13 = vector.shape_cast %12 : vector<1x8x8xf32> to vector<8x8xf32>
    %cst_13 = arith.constant dense<0.000000e+00> : vector<8x8xf32>
    %14 = tpu.matmul %4, %4, %cst_13 {dimension_numbers = #tpu.dot_dimension_numbers<[1], [1], [0], [0], [0, 0, 1, 0], [], []>} : vector<8x512xf32>, vector<8x512xf32>, vector<8x8xf32> -> vector<8x8xf32>
    %15 = arith.addf %13, %14 : vector<8x8xf32>
    %c0_14 = arith.constant 0 : index
    %c0_15 = arith.constant 0 : index
    %c0_16 = arith.constant 0 : index
    %16 = vector.load %arg5[%c0_14, %c0_15, %c0_16] : memref<1x8x8xf32, #tpu.memory_space<vmem>>, vector<1x8x8xf32>
    %17 = vector.shape_cast %16 : vector<1x8x8xf32> to vector<8x8xf32>
    %18 = vector.shape_cast %15 : vector<8x8xf32> to vector<1x8x8xf32>
    tpu.vector_store %arg5[%c0_14, %c0_15, %c0_16], %18 {strides = array<i32>} : memref<1x8x8xf32, #tpu.memory_space<vmem>>, vector<1x8x8xf32>,
    return
  }
  func.func @transform_0(%arg0: i32, %arg1: i32) -> (i32, i32) {
    %c1_i32 = arith.constant 1 : i32
    %0 = arith.muli %arg0, %c1_i32 : i32
    %1 = arith.addi %0, %arg1 : i32
    %c0_i32 = arith.constant 0 : i32
    %c0_i32_0 = arith.constant 0 : i32
    return %c0_i32, %1 : i32, i32
  }
  func.func @transform_1(%arg0: i32, %arg1: i32) -> (i32, i32) {
    %c1_i32 = arith.constant 1 : i32
    %0 = arith.muli %arg0, %c1_i32 : i32
    %1 = arith.addi %0, %arg1 : i32
    %c0_i32 = arith.constant 0 : i32
    %c0_i32_0 = arith.constant 0 : i32
    return %c0_i32, %1 : i32, i32
  }
  func.func @transform_2(%arg0: i32, %arg1: i32) -> (i32, i32, i32) {
    %c0_i32 = arith.constant 0 : i32
    %c0_i32_0 = arith.constant 0 : i32
    %c0_i32_1 = arith.constant 0 : i32
    return %arg0, %c0_i32, %c0_i32_0 : i32, i32, i32
  }
  func.func @transform_3(%arg0: i32, %arg1: i32) -> (i32, i32, i32) {
    %c0_i32 = arith.constant 0 : i32
    %c0_i32_0 = arith.constant 0 : i32
    %c0_i32_1 = arith.constant 0 : i32
    return %arg0, %c0_i32, %c0_i32_0 : i32, i32, i32
  }
}

</mosaic_0001>

<bundles_post_ra>
// kernel: tpu_custom_call.1
= control target key start
LH: loop header
LB: loop body
LE: loop exit
PB: predicated region body
PF: predicated region fallthrough
CT: control target
= control target key end

     0   :  { %9 = vsyncpa [#allocation3], 0  ;;  %s1226_s0 = inlined_call_operand.hbm [shape: f32[8,1024], index: 0, kind: input, shape index: {}]   ;;  %s1227_s1 = inlined_call_operand.hbm [shape: f32[8,1024], index: 1, kind: input, shape index: {}]   ;;  %s1228_s2 = inlined_call_operand.hbm [shape: f32[2,8,8], index: 2, kind: output, shape index: {0}]   ;;  %s1229_s3 = inlined_call_operand.hbm [shape: f32[2,8,8], index: 3, kind: output, shape index: {1}]  }
   0x1   :  { %11 = vsyncpa [#allocation3 + $0x1], 0 }
   0x2   :  { %12 = vsyncpa [#allocation6], 0 }
   0x3   :  { %14 = vsyncpa [#allocation6 + $0x1], 0 }
   0x4   :  { %15 = vsyncpa [#allocation4], 0 }
   0x5   :  { %17 = vsyncpa [#allocation4 + $0x1], 0 }
   0x6   :  { %18 = vsyncpa [#allocation9], 0 }
   0x7   :  { %20 = vsyncpa [#allocation9 + $0x1], 0  ;;  %s1020_s12 = smov 0   ;;  %s1022_s13 = smov 0  }
   0x8   :  { %s1024_s14 = smov 0   ;;  %s1026_s15 = smov 0  }
   0x9   :  { %s1028_s16 = smov 0   ;;  %s1030_s17 = smov 0  }
   0xa LB: > { %s727_s18 = sadd.s32 4294967295, %s993_s17   ;;  %s728_s19 = sadd.s32 4294967294, %s993_s17   ;;  %s993_s17 = sphi %s1030_s17, %s26_s17   ;;  %s989_s16 = sphi %s1028_s16, %s1241_s16   ;;  %s985_s15 = sphi %s1026_s15, %s1240_s15   ;;  %s981_s14 = sphi %s1024_s14, %s1239_s14   ;;  %s977_s13 = sphi %s1022_s13, %s1238_s13   ;;  %s973_s12 = sphi %s1020_s12, %s1237_s12  }
   0xb   : > { %s38_s20 = sadd.s32 1, %s989_s16  ;;  %s47_s21 = sadd.s32 1, %s981_s14 }
   0xc   : > { %p40_p0 = scmp.ge.s32.totalorder %s38_s20, 2  ;;  %p54_p1 = scmp.ne.s32.totalorder %s981_s14, %s977_s13 }
   0xd   : > { %p55_p2 = scmp.eq.s32.totalorder %s993_s17, 0  ;;  %p60_p3 = scmp.ne.s32.totalorder %s977_s13, %s973_s12 }
   0xe   : > { %s1243_s20 = smov (%p40_p0, %s38_s20), 0  ;;  %p61_p5 = scmp.eq.s32.totalorder %s727_s18, 0 }
   0xf   : > { %p1061_p4 = por %p55_p2, %p54_p1  ;;  %s44_s23 = ssub.s32 %s989_s16, %s1243_s20 }
  0x10   : > { %p112_p6 = scmp.eq.s32.totalorder %s727_s18, 1  ;;  %p45_p7 = scmp.eq.s32.totalorder %s44_s23, 0 }
  0x11   : > { %p1067_p8 = por %p61_p5, %p60_p3  ;;  %p118_p10 = scmp.eq.s32.totalorder %s728_s19, 1 }
  0x12   : > { %p1071_p9 = por %p112_p6, %p54_p1  ;;  %p772_p13 = scmp.lt.s32.totalorder %s993_s17, 2 }
  0x13   : > { %s1076_s26 = scalar_select %p45_p7, %s981_s14, %s47_s21  }
  0x14   : > { %p1078_p11 = por %p118_p10, %p60_p3  ;;  %s1085_s28 = sand.u32 1, %s981_s14  }
  0x15   : > { %s731_s29 = sshll.u32 %s1085_s28, 5  ;;  %s748_s30 = sshll.u32 %s989_s16, 9 }
  0x16   : > { %s175_s6 = scalar_lea.hbm %s1226_s0, %s748_s30  ;;  %s168_s7 = scalar_lea.vmem [#allocation2], %s731_s29 }
  0x17   : > { %s177_s8 = sshll.u32 %s168_s7, 4  ;;  %p1094_p0 = pnand %p772_p13, %p1061_p4  ;;  %s178_s8 = int_to_ptr.vmem [resolvable:$true] %s177_s8 }
  0x18   : > { %p737_p1 = scmp.ge.s32.totalorder %s993_s17, 1  ;;  %p202_p2 = scmp.lt.s32.totalorder %s993_s17, 3 }
  0x19   : > { %s165_s10 = scalar_lea.sflag [#allocation3], %s1085_s28  ;;  %p825_p3 = pneg %p1094_p0 }
  0x1a   : > { %s836_s11 = scalar_lea.vmem %s178_s8, 512  ;;  %s995_s18 = smov [#allocation2]  }
  0x1b   : > { %p837_p5 = scmp.ne.s32.totalorder %s178_s8, %s836_s11  ;;  %s841_s19 = sshll.u32 %s995_s18, 4  ;;  %s842_s19 = int_to_ptr.vmem [resolvable:$false] %s841_s19 }
  0x1c   : > { %s843_s21 = scalar_lea.vmem %s842_s19, 1024  ;;  %p844_p4 = scmp.lt.s32.totalorder %s178_s8, %s842_s19 }
  0x1d   : > { %p839_p6 = pnand %p837_p5, %p825_p3  ;;  %p845_p10 = scmp.lt.s32.totalorder %s843_s21, %s836_s11 }
  0x1f   : > { %p840_p7 = pneg %p839_p6  ;;  %p846_p13 = por %p845_p10, %p844_p4 }
  0x21   : > { %p847_p12 = pnand %p846_p13, %p840_p7 }
  0x23   : > { %850 = shalt.err (!%p847_p12)
}
  0x24   : > { %761 = dma.hbm_to_vmem [thread:$0]  (!%p1094_p0), %s175_s6, 512, %s178_s8, %s165_s10  }
  0x25   : > { %p1112_p5 = pnand %p737_p1, %p202_p2  ;;  %s195_s5 = scalar_lea.hbm %s1227_s1, %s748_s30 }
  0x26   : > { %s188_s7 = scalar_lea.vmem [#allocation5], %s731_s29  ;;  %s185_s18 = scalar_lea.sflag [#allocation6], %s1085_s28 }
  0x27   : > { %s197_s11 = sshll.u32 %s188_s7, 4  ;;  %s996_s6 = smov [#allocation5]   ;;  %s198_s11 = int_to_ptr.vmem [resolvable:$true] %s197_s11 }
  0x28   : > { %s864_s19 = scalar_lea.vmem %s198_s11, 512  ;;  %s869_s8 = sshll.u32 %s996_s6, 4  ;;  %s870_s8 = int_to_ptr.vmem [resolvable:$false] %s869_s8 }
  0x29   : > { %p865_p12 = scmp.ne.s32.totalorder %s198_s11, %s864_s19  ;;  %s871_s10 = scalar_lea.vmem %s870_s8, 1024 }
  0x2a   : > { %p872_p1 = scmp.lt.s32.totalorder %s198_s11, %s870_s8  ;;  %p873_p2 = scmp.lt.s32.totalorder %s871_s10, %s864_s19 }
  0x2b   : > { %p867_p6 = pnand %p865_p12, %p825_p3 }
  0x2c   : > { %p874_p4 = por %p873_p2, %p872_p1 }
  0x2d   : > { %p868_p7 = pneg %p867_p6 }
  0x2f   : > { %p875_p10 = pnand %p874_p4, %p868_p7 }
  0x31   : > { %878 = shalt.err (!%p875_p10)
}
  0x32   : > { %764 = dma.hbm_to_vmem [thread:$0]  (!%p1094_p0), %s195_s5, 512, %s198_s11, %s185_s18  }
  0x33   : > { %206 = sbr.rel (%p1112_p5) target bundleno = 297 (0x129), region = 28  ;;  %s1128_s28 = sand.u32 (!%p1112_p5), 1, %s977_s13  }
  0x34   : > { %s738_s29 = sshll.u32 (!%p1112_p5), %s1128_s28, 5  ;;  %s209_s30 = scalar_lea.sflag (!%p1112_p5), [#allocation3], %s1128_s28 }
  0x35   : > { %s212_s21 = scalar_lea.vmem (!%p1112_p5), [#allocation2], %s738_s29 }
  0x38   : > { %956 = dma.done.wait (%p1067_p8), %s209_s30, 512  }
  0x39   : > { %958 = vsyncadd (%p1067_p8), %s209_s30, 4294966784  ;;  %s218_s9 = scalar_lea.sflag [#allocation6], %s1128_s28  ;;  %s221_s23 = scalar_lea.vmem [#allocation5], %s738_s29 }
  0x3a   : > { %960 = dma.done.wait (%p1067_p8), %s218_s9, 512  }
  0x3b   : > { %962 = vsyncadd (%p1067_p8), %s218_s9, 4294966784  ;;  %v266_v0 = vld [vmem:[%s212_s21 + $0x8] sm:$0xff]  ;;  %v268_v1 = vld [vmem:[%s212_s21 + $0x18] sm:$0xff]  ;;  %s740_s24 = sshll.u32 %s1128_s28, 3  ;;  %vm262_vm0 = vcmask 64512   ;;  %v997_v8 = vmov 0.0  }
  0x3c   : > { %v265_v2 = vld [vmem:[%s212_s21] sm:$0xff]  ;;  %304 = vmatprep.subr.mxu0 %v266_v0  ;;  %374 = vmatprep.subr.mxu1 %v268_v1  ;;  %v267_v3 = vld [vmem:[%s212_s21 + $0x10] sm:$0xff]  ;;  %v270_v4 = vld [vmem:[%s221_s23 + $0x8] sm:$0xff]  ;;  %s246_s22 = scalar_lea.vmem [#allocation7], %s740_s24  ;;  %s1143_s4 = scalar_lea.vmem [#allocation8], %s740_s24 }
  0x3d   : > { %v272_v5 = vld [vmem:[%s221_s23 + $0x18] sm:$0xff]  ;;  %305 = vmatpush1.xpose.msra.mxu0 %v265_v2  ;;  %375 = vmatpush1.xpose.msra.mxu1 %v267_v3  ;;  %v269_v6 = vld [vmem:[%s221_s23] sm:$0xff]  ;;  %v271_v7 = vld [vmem:[%s221_s23 + $0x10] sm:$0xff]  ;;  %263 = vst.msk [vmem:[%s246_s22] sm:$0xff] %vm262_vm0, %v997_v8  ;;  %s744_s5 = sshll.u32 %s985_s15, 7  ;;  %s579_s7 = sshll.u32 %s246_s22, 4  ;;  %s1155_s7 = int_to_ptr.vmem [resolvable:$true] %s579_s7 }
  0x3e   : > { %338 = vmatprep.mubr.f32.mxu0 %v266_v0  ;;  %408 = vmatprep.mubr.f32.mxu1 %v268_v1  ;;  %264 = vst.msk [vmem:[%s1143_s4] sm:$0xff] %vm262_vm0, %v997_v8  ;;  %s1153_s19 = scalar_lea.hbm %s1228_s2, %s744_s5  ;;  %s592_s6 = sshll.u32 %s1143_s4, 4  ;;  %s593_s6 = int_to_ptr.vmem [resolvable:$true] %s592_s6 }
  0x3f   : > { %448 = vmatprep.subr.mxu0 %v270_v4  ;;  %518 = vmatprep.subr.mxu1 %v272_v5  ;;  %s561_s8 = scalar_lea.sflag [#allocation4], %s1128_s28  ;;  %s879_s10 = scalar_lea.vmem %s1155_s7, 128 }
  0x40   : > { %339 = vmatmul.mubr.f32.vlgmr.msra.gmra.mxu0 %v265_v2  ;;  %409 = vmatmul.mubr.f32.vlgmr.msra.gmra.mxu1 %v267_v3  ;;  %p880_p8 = scmp.ne.s32.totalorder %s1155_s7, %s879_s10  ;;  %s998_s29 = smov [#allocation7]  }
  0x41   : > { %449 = vmatpush1.xpose.msra.mxu0 %v269_v6  ;;  %519 = vmatpush1.xpose.msra.mxu1 %v271_v7  ;;  %s883_s30 = sshll.u32 %s998_s29, 4  ;;  %s884_s30 = int_to_ptr.vmem [resolvable:$false] %s883_s30 }
  0x42   : > { %482 = vmatprep.mubr.f32.mxu0 %v270_v4  ;;  %552 = vmatprep.mubr.f32.mxu1 %v272_v5  ;;  %p881_p0 = pnand %p880_p8, %p1071_p9  ;;  %s885_s21 = scalar_lea.vmem %s884_s30, 256 }
  0x43   : > { %p886_p13 = scmp.lt.s32.totalorder %s1155_s7, %s884_s30  ;;  %p887_p5 = scmp.lt.s32.totalorder %s885_s21, %s879_s10 }
  0x44   : > { %483 = vmatmul.mubr.f32.vlgmr.msra.gmra.mxu0 %v269_v6  ;;  %553 = vmatmul.mubr.f32.vlgmr.msra.gmra.mxu1 %v271_v7  ;;  %v273_v10 = vld [vmem:[%s246_s22] sm:$0xff]  ;;  %p882_p3 = pneg %p881_p0 }
  0x45   : > { %v417_v17 = vld [vmem:[%s1143_s4] sm:$0xff]  ;;  %p888_p12 = por %p887_p5, %p886_p13 }
  0x47   : > { %p889_p6 = pnand %p888_p12, %p882_p3 }
 0x100   : > { %v340_v9 = vpop.f32.mrf.mxu0  ;;  %v410_v11 = vpop.f32.mrf.mxu1 }
 0x101   : > { %v411_v12 = vadd.f32 %v410_v11, %v340_v9 }
 0x102   : > { %v342_v13 = vpop.f32.mrf.mxu0  ;;  %v412_v14 = vpop.f32.mrf.mxu1 }
 0x103   : > { %v414_v15 = vadd.f32 %v411_v12, %v273_v10 }
 0x104   : > { %v484_v16 = vpop.f32.mrf.mxu0  ;;  %v554_v18 = vpop.f32.mrf.mxu1 }
 0x105   : > { %416 = vst.msk [vmem:[%s246_s22] sm:$0xff] %vm262_vm0, %v414_v15  ;;  %v555_v19 = vadd.f32 %v554_v18, %v484_v16 }
 0x106   : > { %v486_v20 = vpop.f32.mrf.mxu0  ;;  %v556_v21 = vpop.f32.mrf.mxu1 }
 0x107   : > { %892 = shalt.err (!%p889_p6)
}
 0x108   : > { %s893_s9 = scalar_lea.hbm %s1153_s19, 128  ;;  %s897_s22 = scalar_lea.hbm %s1228_s2, 256 }
 0x109   : > { %p894_p7 = scmp.ne.s32.totalorder %s1153_s19, %s893_s9  ;;  %p898_p4 = scmp.lt.s32.totalorder %s1153_s19, %s1228_s2 }
 0x10a   : > { %p899_p10 = scmp.lt.s32.totalorder %s897_s22, %s893_s9 }
 0x10b   : > { %p895_p1 = pnand %p894_p7, %p1071_p9 }
 0x10c   : > { %p900_p8 = por %p899_p10, %p898_p4 }
 0x10d   : > { %p896_p2 = pneg %p895_p1 }
 0x10f   : > { %p901_p0 = pnand %p900_p8, %p896_p2 }
 0x111   : > { %904 = shalt.err (!%p901_p0)
}
 0x112   : > { %754 = dma.vmem_to_hbm [thread:$0]  (%p1071_p9), %s1155_s7, 128, %s1153_s19, %s561_s8   ;;  %v558_v22 = vadd.f32 %v555_v19, %v417_v17 }
 0x113   : > { %s590_s30 = scalar_lea.hbm %s1229_s3, %s744_s5  ;;  %s566_s21 = scalar_lea.sflag [#allocation9], %s1128_s28 }
 0x114   : > { %559 = vst.msk [vmem:[%s1143_s4] sm:$0xff] %vm262_vm0, %v558_v22  ;;  %s905_s9 = scalar_lea.vmem %s593_s6, 128  ;;  %s999_s23 = smov [#allocation8]  }
 0x115   : > { %p906_p3 = scmp.ne.s32.totalorder %s593_s6, %s905_s9  ;;  %s909_s24 = sshll.u32 %s999_s23, 4  ;;  %s910_s24 = int_to_ptr.vmem [resolvable:$false] %s909_s24 }
 0x116   : > { %s911_s7 = scalar_lea.vmem %s910_s24, 256  ;;  %p912_p12 = scmp.lt.s32.totalorder %s593_s6, %s910_s24 }
 0x117   : > { %p907_p13 = pnand %p906_p3, %p1071_p9  ;;  %p913_p6 = scmp.lt.s32.totalorder %s911_s7, %s905_s9 }
 0x119   : > { %p908_p5 = pneg %p907_p13  ;;  %p914_p7 = por %p913_p6, %p912_p12 }
 0x11b   : > { %p915_p1 = pnand %p914_p7, %p908_p5 }
 0x11d   : > { %918 = shalt.err (!%p915_p1)
}
 0x11e   : > { %s919_s15 = scalar_lea.hbm %s590_s30, 128  ;;  %s923_s5 = scalar_lea.hbm %s1229_s3, 256 }
 0x11f   : > { %p920_p2 = scmp.ne.s32.totalorder %s590_s30, %s919_s15  ;;  %p924_p8 = scmp.lt.s32.totalorder %s590_s30, %s1229_s3 }
 0x120   : > { %p925_p0 = scmp.lt.s32.totalorder %s923_s5, %s919_s15 }
 0x121   : > { %p921_p4 = pnand %p920_p2, %p1071_p9 }
 0x122   : > { %p926_p3 = por %p925_p0, %p924_p8 }
 0x123   : > { %p922_p10 = pneg %p921_p4 }
 0x125   : > { %p927_p13 = pnand %p926_p3, %p922_p10 }
 0x127   : > { %930 = shalt.err (!%p927_p13)
}
 0x128   : > { %755 = dma.vmem_to_hbm [thread:$0]  (%p1071_p9), %s593_s6, 128, %s590_s30, %s566_s21  }
 0x129 PF: > { %s604_s22 = sand.u32 1, %s973_s12   ;;  %p1236_p5 = scmp.ge.s32.totalorder %s993_s17, 2 }
 0x12a   : > { %s605_s11 = scalar_lea.sflag [#allocation4], %s604_s22 }
 0x12b   : > { %p766_p12 = pnand %p1236_p5, %p1078_p11 }
 0x12d   : > { %p767_p6 = pneg %p766_p12 }
 0x12f   : > { %964 = dma.done.wait (%p767_p6), %s605_s11, 128  }
 0x130   : > { %966 = vsyncadd (%p767_p6), %s605_s11, 4294967168  ;;  %s614_s18 = scalar_lea.sflag [#allocation9], %s604_s22 }
 0x131   : > { %968 = dma.done.wait (%p767_p6), %s614_s18, 128  }
 0x132   : > { %970 = vsyncadd (%p767_p6), %s614_s18, 4294967168  ;;  %s26_s17 = sadd.s32 1, %s993_s17   ;;  %s1237_s12 = smov %s977_s13 }
 0x133   : > { %p23_p7 = scmp.ge.s32.totalorder %s26_s17, 4   ;;  %s1238_s13 = smov %s981_s14 }
 0x134   : > { %s1239_s14 = smov %s1076_s26  ;;  %s1240_s15 = smov %s989_s16 }
 0x135   : > { %s1241_s16 = smov %s1243_s20  ;;  %25 = sbr.rel (!%p23_p7) target bundleno = 10 (0xa), region = 107 }
 0x13a   :  { %619 = vsyncpa [#allocation3], 1 }
 0x13b   :  { %621 = vsyncpa [#allocation3 + $0x1], 1 }
 0x13c   :  { %622 = vsyncpa [#allocation6], 1 }
 0x13d   :  { %624 = vsyncpa [#allocation6 + $0x1], 1 }
 0x13e   :  { %625 = vsyncpa [#allocation4], 1 }
 0x13f   :  { %627 = vsyncpa [#allocation4 + $0x1], 1 }
 0x140   :  { %628 = vsyncpa [#allocation9], 1 }
 0x141   :  { %630 = vsyncpa [#allocation9 + $0x1], 1 }

</bundles_post_ra>
